<compile_context>
chip_gen: v7x
topology: tpu7x:2x2x1
jax: 0.10.0
libtpu: 0.0.40
codegen_flags: <defaults>
</compile_context>

<pallas_src>
import jax
import jax.numpy as jnp
from jax.experimental import pallas as pl
from jax.experimental.pallas import tpu as pltpu


# ----------------------------------------------------------------------------
# Pallas kernel: per (batch-tile, candidate-tile) block compute
#   out[b, 0, n] = sum_h ctx[b, 0, h] * qt[b, h, n]
# which is exactly torch.matmul(context.unsqueeze(1), quote.permute(0, 2, 1)).
# ----------------------------------------------------------------------------
def _score_kernel(ctx_ref, qt_ref, out_ref):
    # ctx_ref: (Bt, 1, H) bf16   qt_ref: (Bt, H, Nt) bf16   out_ref: (Bt, 1, Nt) f32
    # Canonical MXU form: LHS contracts its last dim, RHS contracts its
    # second-to-last dim -> no in-kernel transpose of the qt tile.
    out_ref[...] = jnp.einsum(
        "bqh,bhn->bqn", ctx_ref[...], qt_ref[...],
        preferred_element_type=jnp.float32,
    ).astype(out_ref.dtype)


def _pick_tiles(B, N, H, budget_bytes, min_steps=4):
    """Jointly size (block_b, block_n) against a double-buffered VMEM budget
    while keeping the parallel grid at >= min_steps total steps (when possible)."""
    LANE = 128
    n_ceil = pl.cdiv(N, LANE) * LANE
    block_n = min(1024, n_ceil)

    def working_set(bb, bn):
        # double-buffered bf16 ctx + bf16 qt inputs, double-buffered f32 output
        return 2 * (bb * 1 * H * 2 + bb * H * bn * 2 + bb * 1 * bn * 4)

    while block_n > LANE and working_set(1, block_n) > budget_bytes:
        block_n -= LANE

    grid_n = pl.cdiv(N, block_n)
    # Max achievable steps (block_b == 1); never demand more than that.
    target_steps = min(min_steps, B * grid_n)

    block_b = 1
    for bb in range(B, 0, -1):
        grid_b = pl.cdiv(B, bb)
        if working_set(bb, block_n) > budget_bytes:
            continue
        if grid_b * grid_n < target_steps:
            continue
        block_b = bb
        break
    return block_b, block_n


def quotrec_scores(ctx_v, qt_t, *,
                   vmem_budget_bytes=20 * 1024 * 1024,
                   vmem_limit_bytes=32 * 1024 * 1024):
    """ctx_v: (B, H) f32 (already projected through the folded weights)
       qt_t : (B, H, N) bf16 pooled quote features (candidate axis last / lane-dense)
       returns (B, N) f32 scores."""
    B, H = ctx_v.shape
    _, _, N = qt_t.shape

    # Context operand is tiny; cast AFTER the f32 projection folding.
    ctx_bf = ctx_v[:, None, :].astype(jnp.bfloat16)            # (B, 1, H)

    block_b, block_n = _pick_tiles(B, N, H, vmem_budget_bytes)
    grid = (pl.cdiv(B, block_b), pl.cdiv(N, block_n))

    # No explicit padding: out-of-bounds qt lanes in the final candidate tile
    # only feed output columns >= N, which the out-spec masks on store (H is
    # contracted in full, each output column depends only on its own qt lane).
    out = pl.pallas_call(
        _score_kernel,
        out_shape=jax.ShapeDtypeStruct((B, 1, N), jnp.float32),
        grid_spec=pltpu.PrefetchScalarGridSpec(
            num_scalar_prefetch=0,
            grid=grid,
            in_specs=[
                pl.BlockSpec((block_b, 1, H), lambda b, n: (b, 0, 0)),
                pl.BlockSpec((block_b, H, block_n), lambda b, n: (b, 0, n)),
            ],
            out_specs=pl.BlockSpec((block_b, 1, block_n), lambda b, n: (b, 0, n)),
        ),
        compiler_params=pltpu.CompilerParams(
            dimension_semantics=("parallel", "parallel"),
            vmem_limit_bytes=vmem_limit_bytes),
    )(ctx_bf, qt_t)

    return out[:, 0, :]   # squeeze(dim=1)


# ----------------------------------------------------------------------------
# Surrogate sub-models (deterministic embedding + pooling glue in plain JAX).
# Their final linear projections are folded into the score path below.
# ----------------------------------------------------------------------------
def contex_model_pool(input_ids, token_type_ids, attention_masks, mask_ids, tok_emb, type_emb):
    # BERT-like: token + segment embeddings, zero padded positions, take the
    # representation at the [MASK] position given by mask_ids.
    h = tok_emb[input_ids] + type_emb[token_type_ids]            # (B, S, H)
    h = h * attention_masks[..., None].astype(h.dtype)
    B = input_ids.shape[0]
    pooled = h[jnp.arange(B), mask_ids]                          # (B, H)
    return pooled[:, None, :]                                    # (B, 1, H)  == unsqueeze(dim=1)


def quote_model_pool(quotes, tok_emb):
    # quotes: (B, N, L) candidate-quote token ids; mean-pool tokens per candidate.
    # Emitted directly in (B, H, N) layout and bf16 so the transpose + cast fuse
    # with the mean-pool producer (no extra HBM pass over the quote features) and
    # the Pallas kernel contracts H in canonical MXU form with a lane-dense
    # candidate axis.
    h = tok_emb[quotes]                                          # (B, N, L, H)
    pooled = jnp.mean(h, axis=2)                                 # (B, N, H) f32
    pooled_t = jnp.swapaxes(pooled, 1, 2).astype(jnp.bfloat16)   # (B, H, N) bf16
    # torch.LongTensor(labels): deterministic surrogate labels from the quote model.
    labels = jnp.arange(quotes.shape[0], dtype=jnp.int32) % quotes.shape[1]
    # TODO(synk): for production shapes, fuse the embedding gather + mean-pool into
    # the Pallas kernel so the (B, N, L, H) intermediate never materializes in HBM.
    return pooled_t, labels


def quotrec_net1_forward(input_ids, token_type_ids, attention_masks, mask_ids, quotes, params):
    pooled_ctx = contex_model_pool(
        input_ids, token_type_ids, attention_masks, mask_ids,
        params["tok_emb"], params["type_emb"])                        # (B, 1, H) f32
    qt_t, labels = quote_model_pool(quotes, params["tok_emb"])        # (B, H, N) bf16

    hi = jax.lax.Precision.HIGHEST
    # Fold the two projections:  (pc @ Wc) @ (pq @ Wq)^T == (pc @ M) @ pq^T, M = Wc @ Wq^T.
    folded = jnp.dot(params["w_ctx"], params["w_qt"].T, precision=hi)  # (H, H) f32
    # Context projection as ONE batched (B,H)@(H,H) matmul, hoisted out of the grid.
    ctx_v = jnp.dot(pooled_ctx[:, 0, :], folded, precision=hi)         # (B, H) f32

    outputs = quotrec_scores(ctx_v, qt_t)                              # (B, N) f32
    # torch.LongTensor -> int64; JAX without x64 uses int32 for integer labels.
    return outputs, labels


if __name__ == "__main__":
    B, S, N, L, H, V, T = 2, 8, 8, 8, 32, 64, 2

    key = jax.random.PRNGKey(0)
    k_tok, k_type, k_wc, k_wq, k_ids, k_tt, k_mask, k_q = jax.random.split(key, 8)

    params = {
        "tok_emb": jax.random.normal(k_tok, (V, H), jnp.float32) * 0.02,
        "type_emb": jax.random.normal(k_type, (T, H), jnp.float32) * 0.02,
        "w_ctx": jax.random.normal(k_wc, (H, H), jnp.float32) * 0.1,
        "w_qt": jax.random.normal(k_wq, (H, H), jnp.float32) * 0.1,
    }

    input_ids = jax.random.randint(k_ids, (B, S), 0, V, jnp.int32)
    token_type_ids = jax.random.randint(k_tt, (B, S), 0, T, jnp.int32)
    attention_masks = jnp.ones((B, S), jnp.float32)
    mask_ids = jax.random.randint(k_mask, (B,), 0, S, jnp.int32)
    quotes = jax.random.randint(k_q, (B, N, L), 0, V, jnp.int32)

    forward = jax.jit(quotrec_net1_forward)
    outputs, labels = forward(
        input_ids, token_type_ids, attention_masks, mask_ids, quotes, params)
    outputs = jax.block_until_ready(outputs)
    labels = jax.block_until_ready(labels)

    # Pure-JAX reference of the ORIGINAL (unfused, f32) computation:
    # (context @ Wc).unsqueeze(1) @ (quote @ Wq).permute(0,2,1), squeezed.
    pooled_ctx = contex_model_pool(input_ids, token_type_ids, attention_masks, mask_ids,
                                   params["tok_emb"], params["type_emb"])
    pooled_qt_f32 = jnp.mean(params["tok_emb"][quotes], axis=2)        # (B, N, H) f32
    ref = jnp.einsum("blh,hk,bnj,jk->bn", pooled_ctx, params["w_ctx"],
                     pooled_qt_f32, params["w_qt"],
                     precision=jax.lax.Precision.HIGHEST)

    assert outputs.shape == (B, N) and labels.shape == (B,)
    # Tolerance accounts for the bf16 cast of the kernel operands (documented).
    assert jnp.allclose(outputs, ref, rtol=2e-2, atol=2e-5)

    print("KERNEL_OK")
</pallas_src>

<mosaic_0001>
module attributes {stable_mosaic.version = 11 : i64} {
  func.func @_score_kernel(%arg0: i32, %arg1: i32, %arg2: memref<1x1x32xbf16, #tpu.memory_space<vmem>>, %arg3: memref<1x32x128xbf16, #tpu.memory_space<vmem>>, %arg4: memref<1x1x128xf32, #tpu.memory_space<vmem>>) attributes {dimension_semantics = [#tpu.dimension_semantics<parallel>, #tpu.dimension_semantics<parallel>], iteration_bounds = array<i64: 2, 1>, scalar_prefetch = 0 : i64, scratch_operands = 0 : i64, tpu.core_type = #tpu.core_type<tc>, window_params = [{transform_indices = @transform_0, window_bounds = array<i64: 1, 1, 32>}, {transform_indices = @transform_1, window_bounds = array<i64: 1, 32, 128>}, {transform_indices = @transform_2, window_bounds = array<i64: 1, 1, 128>}]} {
    %c0 = arith.constant 0 : index
    %c0_0 = arith.constant 0 : index
    %c0_1 = arith.constant 0 : index
    %0 = vector.load %arg2[%c0, %c0_0, %c0_1] : memref<1x1x32xbf16, #tpu.memory_space<vmem>>, vector<1x1x32xbf16>
    %c0_2 = arith.constant 0 : index
    %c0_3 = arith.constant 0 : index
    %c0_4 = arith.constant 0 : index
    %1 = vector.load %arg3[%c0_2, %c0_3, %c0_4] : memref<1x32x128xbf16, #tpu.memory_space<vmem>>, vector<1x32x128xbf16>
    "tpu.trace_start"() <{level = 10 : i32, message = "bqh,bhn->bqn"}> : () -> ()
    %cst = arith.constant dense<0.000000e+00> : vector<1x1x128xf32>
    %2 = tpu.matmul %0, %1, %cst {dimension_numbers = #tpu.dot_dimension_numbers<[2], [1], [1], [2], [0, 0, 0, 1, 1, 2], [0], [0]>} : vector<1x1x32xbf16>, vector<1x32x128xbf16>, vector<1x1x128xf32> -> vector<1x1x128xf32>
    "tpu.trace_stop"() : () -> ()
    %c0_5 = arith.constant 0 : index
    %c0_6 = arith.constant 0 : index
    %c0_7 = arith.constant 0 : index
    %3 = vector.load %arg4[%c0_5, %c0_6, %c0_7] : memref<1x1x128xf32, #tpu.memory_space<vmem>>, vector<1x1x128xf32>
    tpu.vector_store %arg4[%c0_5, %c0_6, %c0_7], %2 {strides = array<i32>} : memref<1x1x128xf32, #tpu.memory_space<vmem>>, vector<1x1x128xf32>,
    return
  }
  func.func @transform_0(%arg0: i32, %arg1: i32) -> (i32, i32, i32) {
    %c0_i32 = arith.constant 0 : i32
    %c0_i32_0 = arith.constant 0 : i32
    %c0_i32_1 = arith.constant 0 : i32
    return %arg0, %c0_i32, %c0_i32_0 : i32, i32, i32
  }
  func.func @transform_1(%arg0: i32, %arg1: i32) -> (i32, i32, i32) {
    %c0_i32 = arith.constant 0 : i32
    %c0_i32_0 = arith.constant 0 : i32
    return %arg0, %c0_i32, %arg1 : i32, i32, i32
  }
  func.func @transform_2(%arg0: i32, %arg1: i32) -> (i32, i32, i32) {
    %c0_i32 = arith.constant 0 : i32
    %c0_i32_0 = arith.constant 0 : i32
    return %arg0, %c0_i32, %arg1 : i32, i32, i32
  }
}

</mosaic_0001>

<bundles_post_ra>
// kernel: quotrec_net1_forward.1
= control target key start
LH: loop header
LB: loop body
LE: loop exit
PB: predicated region body
PF: predicated region fallthrough
CT: control target
= control target key end

     0   :  { %7 = vsyncpa [#allocation3], 0  ;;  %s633_s0 = inlined_call_operand.vmem [shape: bf16[2,1,32], index: 0, kind: input, shape index: {}]   ;;  %s634_s1 = inlined_call_operand.vmem [shape: bf16[2,32,8], index: 1, kind: input, shape index: {}]   ;;  %s635_s2 = inlined_call_operand.hbm [shape: f32[2,1,8], index: 2, kind: output, shape index: {}]  }
   0x1   :  { %9 = vsyncpa [#allocation3 + $0x1], 0  ;;  %s518_s9 = smov 0   ;;  %s520_s10 = smov 0  }
   0x2   :  { %s522_s11 = smov 0   ;;  %s524_s12 = smov 0  }
   0x3   :  { %s526_s13 = smov 0   ;;  %s528_s14 = smov 0  }
   0x4 LB: > { %s336_s15 = sadd.s32 4294967295, %s498_s14   ;;  %s337_s16 = sadd.s32 4294967294, %s498_s14   ;;  %s498_s14 = sphi %s528_s14, %s15_s14   ;;  %s494_s13 = sphi %s526_s13, %s642_s13   ;;  %s490_s12 = sphi %s524_s12, %s641_s12   ;;  %s486_s11 = sphi %s522_s11, %s640_s11   ;;  %s482_s10 = sphi %s520_s10, %s639_s10   ;;  %s478_s9 = sphi %s518_s9, %s638_s9  }
   0x5   : > { %s27_s17 = sadd.s32 1, %s494_s13  ;;  %s90_s18 = sadd.s32 1, %s486_s11 }
   0x6   : > { %p29_p0 = scmp.ge.s32.totalorder %s27_s17, 2  ;;  %p100_p1 = scmp.ne.s32.totalorder %s486_s11, %s482_s10 }
   0x7   : > { %p101_p2 = scmp.eq.s32.totalorder %s336_s15, 1  ;;  %p106_p3 = scmp.ne.s32.totalorder %s482_s10, %s478_s9 }
   0x8   : > { %s644_s17 = smov (%p29_p0, %s27_s17), 0  ;;  %p107_p5 = scmp.eq.s32.totalorder %s337_s16, 1 }
   0x9   : > { %p558_p4 = por %p101_p2, %p100_p1  ;;  %s85_s20 = ssub.s32 %s494_s13, %s644_s17 }
   0xa   : > { %p340_p6 = scmp.ge.s32.totalorder %s498_s14, 1  ;;  %p88_p7 = scmp.eq.s32.totalorder %s85_s20, 0 }
   0xb   : > { %p565_p8 = por %p107_p5, %p106_p3  ;;  %p142_p9 = scmp.lt.s32.totalorder %s498_s14, 3 }
   0xc   : > { %s571_s22 = scalar_select %p88_p7, %s486_s11, %s90_s18  }
   0xd   : > { %p143_p10 = pnand %p340_p6, %p142_p9 }
   0xe   : > { %p169_p11 = scmp.lt.s32.totalorder (!%p143_p10), %s490_s12, 1  ;;  %v500_v0 = vmov (!%p143_p10), 0.0   ;;  %vm501_vm0 = vmmov (!%p143_p10), 0   ;;  %vm198_vm1 = vcmask (!%p143_p10), 261120   ;;  %s167_s3 = sand.u32 (!%p143_p10), 1, %s482_s10  }
   0xf   : > { %146 = sbr.rel (%p143_p10) target bundleno = 261 (0x105), region = 28  ;;  %353 = vmatprep.subr.bf16.mxu0 (!%p143_p10), %v500_v0  ;;  %357 = vmatprep.mubr.msk.bf16.mxu0 (!%p143_p10), %vm501_vm0, %v500_v0  ;;  %s168_s4 = scalar_lea.vmem (!%p143_p10), [#allocation2], %s167_s3 }
  0x10   : > { %s257_s5 = sshll.u32 (!%p143_p10), %s168_s4, 4  ;;  %s346_s6 = sshll.u32 (!%p143_p10), %s490_s12, 4  ;;  %s583_s5 = int_to_ptr.vmem [resolvable:$true] %s257_s5 }
  0x11   : > { %s588_s15 = scalar_lea.hbm (!%p143_p10), %s635_s2, %s346_s6  ;;  %s244_s16 = scalar_lea.sflag (!%p143_p10), [#allocation3], %s167_s3 }
  0x12   : > { %s420_s18 = scalar_lea.vmem (!%p143_p10), %s583_s5, 16 }
  0x13   : > { %p421_p12 = scmp.ne.s32.totalorder (!%p143_p10), %s583_s5, %s420_s18 }
  0x15   : > { %p422_p13 = pnand (!%p143_p10), %p421_p12, %p558_p4 }
  0x16   : > { %s170_s23 = scalar_select %p169_p11, %s490_s12, 1 }
  0x17   : > { %p423_p0 = pneg %p422_p13  ;;  %s502_s12 = smov [#allocation2]  }
  0x18   : > { %s349_s24 = sshll.u32 %s170_s23, 4  ;;  %s171_s30 = scalar_lea.vmem %s633_s0, %s170_s23 }
  0x19   : > { %s179_s27 = scalar_lea.vmem %s634_s1, %s349_s24  ;;  %v181_v3 = vld [vmem:[%s171_s30] sm:$0x1]  ;;  %s424_s20 = sshll.u32 %s502_s12, 4  ;;  %s425_s20 = int_to_ptr.vmem [resolvable:$false] %s424_s20 }
  0x1a   : > { %v418_v1 = vld [vmem:[%s179_s27] sm:$0xff]   ;;  %v419_v2 = vld [vmem:[%s179_s27 + $0x8] sm:$0xff]   ;;  %s426_s23 = scalar_lea.vmem %s425_s20, 32  ;;  %p427_p1 = scmp.lt.s32.totalorder %s583_s5, %s425_s20 }
  0x1b   : > { %354 = vmatpush3.bf16.msra.mxu0 %v418_v1  ;;  %p428_p2 = scmp.lt.s32.totalorder %s426_s23, %s420_s18 }
  0x1c   : > { %355 = vmatprep.subr.bf16.mxu0 %v500_v0 }
  0x1d   : > { %p429_p3 = por %p428_p2, %p427_p1 }
  0x1f   : > { %356 = vmatpush3.bf16.msra.mxu0 %v419_v2  ;;  %p430_p5 = pnand %p429_p3, %p423_p0 }
  0x22   : > { %358 = vmatmul.mubr.msk.bf16.vlgmr.msra.gmra.mrb[0].mxu0 %vm198_vm1, %v181_v3 }
  0xf5   : > { %v236_v4 = vpop.f32.mrb[0].mxu0 }
  0xf6   : > { %242 = vst [vmem:[%s168_s4] sm:$0x1] %v236_v4  ;;  %v359_v5 = vpop.f32.mrb[1].mxu0 }
  0xf7   : > { %v239_v6 = vpop.f32.mrb[2].mxu0 }
  0xf8   : > { %433 = shalt.err (!%p430_p5)
}
  0xf9   : > { %s434_s24 = scalar_lea.hbm %s588_s15, 16  ;;  %s438_s27 = scalar_lea.hbm %s635_s2, 32 }
  0xfa   : > { %p435_p6 = scmp.ne.s32.totalorder %s588_s15, %s434_s24  ;;  %p439_p10 = scmp.lt.u32.totalorder %s588_s15, %s635_s2 }
  0xfb   : > { %p440_p11 = scmp.lt.u32.totalorder %s438_s27, %s434_s24  ;;  %p442_p13 = scmp.lt.u32.totalorder %s434_s24, %s588_s15 }
  0xfc   : > { %p436_p7 = pnand %p435_p6, %p558_p4 }
  0xfd   : > { %p441_p12 = por %p440_p11, %p439_p10 }
  0xfe   : > { %p437_p9 = pneg %p436_p7 }
  0xff   : > { %p443_p0 = por %p442_p13, %p441_p12 }
 0x101   : > { %p444_p1 = pnand %p443_p0, %p437_p9 }
 0x103   : > { %447 = shalt.err (!%p444_p1)
}
 0x104   : > { %361 = dma.vmem_to_hbm [thread:$0]  (%p558_p4), %s583_s5, 16, %s588_s15, %s244_s16   ;;  %v360_v7 = vpop.f32.mrb[3].mxu0 }
 0x105 PF: > { %p367_p2 = scmp.ge.s32.totalorder %s498_s14, 2  ;;  %s269_s30 = sand.u32 1, %s478_s9  }
 0x106   : > { %s270_s3 = scalar_lea.sflag [#allocation3], %s269_s30 }
 0x107   : > { %p364_p3 = pnand %p367_p2, %p565_p8 }
 0x109   : > { %473 = dma.done.wait (!%p364_p3), %s270_s3, 16  }
 0x10a   : > { %475 = vsyncadd (!%p364_p3), %s270_s3, 4294967280  ;;  %s15_s14 = sadd.s32 1, %s498_s14   ;;  %s638_s9 = smov %s482_s10 }
 0x10b   : > { %p12_p5 = scmp.ge.s32.totalorder %s15_s14, 4   ;;  %s639_s10 = smov %s486_s11 }
 0x10c   : > { %s640_s11 = smov %s571_s22  ;;  %s641_s12 = smov %s494_s13 }
 0x10d   : > { %s642_s13 = smov %s644_s17  ;;  %14 = sbr.rel (!%p12_p5) target bundleno = 4 (0x4), region = 66 }
 0x114   :  { %274 = vsyncpa [#allocation3], 1 }
 0x115   :  { %276 = vsyncpa [#allocation3 + $0x1], 1 }

</bundles_post_ra>
